<compile_context>
chip_gen: v5e
topology: v5e:2x2
jax: 0.10.0
libtpu: 0.0.40
codegen_flags: <defaults>
</compile_context>

<pallas_src>
import functools

import jax
import jax.numpy as jnp
from jax.experimental import pallas as pl
from jax.experimental.pallas import tpu as pltpu

LANE = 128


def _round_up(x: int, m: int) -> int:
    return (x + m - 1) // m * m


def _pick_batch_tile(batch: int) -> tuple[int, int]:
    """Pick (TB, B_pad).

    TB is a multiple of 8 (sublane) capped at 512.  Preference order:
      1. minimize batch padding (padded rows are fully-computed garbage),
      2. >=2 batch tiles (so the 'parallel' axis can use both v7x TensorCores),
      3. larger tiles (amortize ~0.35 us/grid-step overhead and fill the 256-wide
         MXU on v6e/v7x; v5e's 128-wide MXU is already matched at 128).
    """
    best = None
    for tb in (512, 256, 128, 64, 32, 16, 8):
        b_pad = _round_up(batch, tb)
        n_tiles = b_pad // tb
        key = (b_pad - batch, 0 if n_tiles >= 2 else 1, -tb)
        if best is None or key < best[0]:
            best = (key, tb, b_pad)
    return best[1], best[2]


def pack_mlp_params(w1, b1, w2, b2):
    """One-time weight packing (hoisted out of the per-call path).

    w1: (input_size, hidden_size)   b1: (hidden_size,) or (1, hidden_size)
    w2: (hidden_size, num_classes)  b2: (num_classes,) or (1, num_classes)

    Returns lane-padded tensors: bf16 weights (MXU rate, half the DMA bytes) and
    f32 biases.  Padded class lanes get a -1e30 bias so softmax gives them ~0 mass.
    """
    d_in, h = w1.shape
    h2, c = w2.shape
    assert h2 == h
    d_pad, h_pad, c_pad = _round_up(d_in, LANE), _round_up(h, LANE), _round_up(c, LANE)

    w1p = jnp.zeros((d_pad, h_pad), jnp.bfloat16).at[:d_in, :h].set(w1.astype(jnp.bfloat16))
    b1p = jnp.zeros((1, h_pad), jnp.float32).at[:, :h].set(
        jnp.asarray(b1, jnp.float32).reshape(1, h))
    w2p = jnp.zeros((h_pad, c_pad), jnp.bfloat16).at[:h, :c].set(w2.astype(jnp.bfloat16))
    b2p = jnp.full((1, c_pad), -1e30, jnp.float32).at[:, :c].set(
        jnp.asarray(b2, jnp.float32).reshape(1, c))
    return w1p, b1p, w2p, b2p


def _make_mlp_kernel(apply_softmax: bool):
    def _mlp_kernel(x_ref, w1_ref, b1_ref, w2_ref, b2_ref, out_ref):
        # x tile (TB, D_pad) bf16; weights bf16 (VMEM-resident); biases f32.
        # fc1: bf16 operands -> MXU, f32 accumulation; bias + ReLU on the VPU in f32.
        h = jnp.dot(x_ref[...], w1_ref[...],
                    preferred_element_type=jnp.float32) + b1_ref[...]       # (TB, H_pad)
        h = jnp.maximum(h, 0.0)

        # fc2: padded class lanes have zero weight columns and a -1e30 bias, so they
        # vanish under softmax.
        logits = jnp.dot(h.astype(jnp.bfloat16), w2_ref[...],
                         preferred_element_type=jnp.float32) + b2_ref[...]  # (TB, C_pad)

        if apply_softmax:
            m = jnp.max(logits, axis=-1, keepdims=True)
            e = jnp.exp(logits - m)                                          # EUP
            inv = pl.reciprocal(jnp.sum(e, axis=-1, keepdims=True), approx=True)
            out_ref[...] = (e * inv).astype(out_ref.dtype)
        else:
            out_ref[...] = logits.astype(out_ref.dtype)

    return _mlp_kernel


@functools.partial(jax.jit, static_argnames=("num_classes", "training"))
def mlp_forward(x, w1p, b1p, w2p, b2p, *, num_classes: int, training: bool = False):
    """Pallas forward pass of SingleHiddenLayerMLP on pre-packed params.

    x: (B, input_size) float32.  w1p/b1p/w2p/b2p come from pack_mlp_params().
    training=False -> softmax over classes (eval mode, matches the PyTorch module);
    training=True  -> raw logits.
    """
    batch, d_in = x.shape
    d_pad, h_pad = w1p.shape
    c_pad = w2p.shape[1]
    assert d_in <= d_pad and num_classes <= c_pad

    tb, b_pad = _pick_batch_tile(batch)
    n_tiles = b_pad // tb
    apply_softmax = not training
    out_dtype = jnp.bfloat16 if apply_softmax else jnp.float32

    # x cast to bf16 once here (half the streamed bytes) and zero-padded to a
    # lane-dense (B_pad, D_pad); padded rows/cols are zeros and drop out of fc1.
    if b_pad == batch and d_pad == d_in:
        xp = x.astype(jnp.bfloat16)
    else:
        xp = jnp.zeros((b_pad, d_pad), jnp.bfloat16).at[:batch, :d_in].set(
            x.astype(jnp.bfloat16))

    # Explicit VMEM budget: single-buffered resident weights + double-buffered
    # x/out streams + headroom (v7x physical VMEM is 64 MiB per TensorCore).
    weight_bytes = 2 * (w1p.size + w2p.size) + 4 * (b1p.size + b2p.size)
    stream_bytes = 2 * tb * d_pad * 2 + 2 * tb * c_pad * jnp.dtype(out_dtype).itemsize
    vmem_limit = min(64 << 20,
                     max(32 << 20, int(1.5 * (weight_bytes + stream_bytes)) + (4 << 20)))

    cost = pl.CostEstimate(
        flops=2 * b_pad * (d_pad * h_pad + h_pad * c_pad),
        transcendentals=b_pad * c_pad if apply_softmax else 0,
        bytes_accessed=(xp.size * 2 + weight_bytes
                        + b_pad * c_pad * jnp.dtype(out_dtype).itemsize),
    )

    resident = dict(pipeline_mode=pl.Buffered(1))  # constant index_map -> one buffer

    out = pl.pallas_call(
        _make_mlp_kernel(apply_softmax),
        out_shape=jax.ShapeDtypeStruct((b_pad, c_pad), out_dtype),
        grid_spec=pltpu.PrefetchScalarGridSpec(
            num_scalar_prefetch=0,
            grid=(n_tiles,),
            in_specs=[
                # x tiles stream with default double-buffering; bump to
                # pl.Buffered(3) only if profiling shows exposed DMA here.
                pl.BlockSpec((tb, d_pad), lambda i: (i, 0)),
                pl.BlockSpec((d_pad, h_pad), lambda i: (0, 0), **resident),  # w1
                pl.BlockSpec((1, h_pad), lambda i: (0, 0), **resident),      # b1
                pl.BlockSpec((h_pad, c_pad), lambda i: (0, 0), **resident),  # w2
                pl.BlockSpec((1, c_pad), lambda i: (0, 0), **resident),      # b2
            ],
            out_specs=pl.BlockSpec((tb, c_pad), lambda i: (i, 0)),
        ),
        compiler_params=pltpu.CompilerParams(
            dimension_semantics=("parallel",),  # batch tiles shard across TCs on v7x
            vmem_limit_bytes=vmem_limit,
        ),
        cost_estimate=cost,
    )(xp, w1p, b1p, w2p, b2p)

    # Slice off padded rows / class lanes; return f32 like the PyTorch module.
    return out[:batch, :num_classes].astype(jnp.float32)


# --- references -------------------------------------------------------------

def _reference_f32(x, w1, b1, w2, b2, softmax=True):
    h = jnp.maximum(x @ w1 + b1.reshape(1, -1), 0.0)
    logits = h @ w2 + b2.reshape(1, -1)
    return jax.nn.softmax(logits, axis=1) if softmax else logits


def _reference_bf16(x, w1, b1, w2, b2, softmax=True):
    # Mimics the kernel's bf16-operand / f32-accumulate matmuls.
    h = jnp.dot(x.astype(jnp.bfloat16), w1.astype(jnp.bfloat16),
                preferred_element_type=jnp.float32) + b1.reshape(1, -1)
    h = jnp.maximum(h, 0.0)
    logits = jnp.dot(h.astype(jnp.bfloat16), w2.astype(jnp.bfloat16),
                     preferred_element_type=jnp.float32) + b2.reshape(1, -1)
    return jax.nn.softmax(logits, axis=1) if softmax else logits


if __name__ == "__main__":
    # Small shapes consistent with the module: batch=8, input_size=64, hidden=32, classes=10.
    B, D_IN, H, C = 8, 64, 32, 10

    key = jax.random.PRNGKey(0)
    kx, kw1, kb1, kw2, kb2 = jax.random.split(key, 5)

    x = jax.random.normal(kx, (B, D_IN), dtype=jnp.float32)

    # Deterministic PyTorch-Linear-style init: U(-1/sqrt(fan_in), 1/sqrt(fan_in)).
    lim1 = 1.0 / (D_IN ** 0.5)
    lim2 = 1.0 / (H ** 0.5)
    w1 = jax.random.uniform(kw1, (D_IN, H), jnp.float32, -lim1, lim1)
    b1 = jax.random.uniform(kb1, (1, H), jnp.float32, -lim1, lim1)
    w2 = jax.random.uniform(kw2, (H, C), jnp.float32, -lim2, lim2)
    b2 = jax.random.uniform(kb2, (1, C), jnp.float32, -lim2, lim2)

    # One-time packing (hoisted out of the per-call path).
    packed = pack_mlp_params(w1, b1, w2, b2)

    # Eval mode: softmax over dim=1 (matches the PyTorch module's forward).
    out = mlp_forward(x, *packed, num_classes=C)
    out = jax.block_until_ready(out)
    assert out.shape == (B, C)

    # Check vs. a reference using the same bf16-operand matmuls (kernel output is
    # bf16, so allow bf16 quantization + approx-reciprocal slack).
    ref_bf16 = _reference_bf16(x, w1, b1, w2, b2)
    assert jnp.allclose(out, ref_bf16, atol=1e-2, rtol=1e-2), \
        float(jnp.max(jnp.abs(out - ref_bf16)))

    # Loose check vs. the pure-f32 reference.
    ref_f32 = _reference_f32(x, w1, b1, w2, b2)
    assert jnp.allclose(out, ref_f32, atol=5e-2, rtol=5e-2), \
        float(jnp.max(jnp.abs(out - ref_f32)))

    # Softmax rows normalize (bf16 output + approx reciprocal -> small slack).
    assert jnp.allclose(jnp.sum(out, axis=1), 1.0, atol=2e-2)

    # Training-mode path (raw logits, f32, no softmax).
    logits = jax.block_until_ready(
        mlp_forward(x, *packed, num_classes=C, training=True))
    assert logits.shape == (B, C)
    assert bool(jnp.all(jnp.isfinite(logits)))
    ref_logits = _reference_bf16(x, w1, b1, w2, b2, softmax=False)
    assert jnp.allclose(logits, ref_logits, atol=1e-2, rtol=1e-2), \
        float(jnp.max(jnp.abs(logits - ref_logits)))

    print("KERNEL_OK")
</pallas_src>

<mosaic_0001>
module attributes {stable_mosaic.version = 11 : i64} {
  func.func @_mlp_kernel(%arg0: i32, %arg1: memref<8x128xbf16, #tpu.memory_space<vmem>>, %arg2: memref<128x128xbf16, #tpu.memory_space<vmem>>, %arg3: memref<1x128xf32, #tpu.memory_space<vmem>>, %arg4: memref<128x128xbf16, #tpu.memory_space<vmem>>, %arg5: memref<1x128xf32, #tpu.memory_space<vmem>>, %arg6: memref<8x128xbf16, #tpu.memory_space<vmem>>) attributes {dimension_semantics = [#tpu.dimension_semantics<parallel>], iteration_bounds = array<i64: 1>, scalar_prefetch = 0 : i64, scratch_operands = 0 : i64, tpu.core_type = #tpu.core_type<tc>, window_params = [{transform_indices = @transform_0, window_bounds = array<i64: 8, 128>}, {pipeline_mode = #tpu.pipeline_mode<synchronous>, transform_indices = @transform_1, window_bounds = array<i64: 128, 128>}, {pipeline_mode = #tpu.pipeline_mode<synchronous>, transform_indices = @transform_2, window_bounds = array<i64: 1, 128>}, {pipeline_mode = #tpu.pipeline_mode<synchronous>, transform_indices = @transform_3, window_bounds = array<i64: 128, 128>}, {pipeline_mode = #tpu.pipeline_mode<synchronous>, transform_indices = @transform_4, window_bounds = array<i64: 1, 128>}, {transform_indices = @transform_5, window_bounds = array<i64: 8, 128>}]} {
    %c0 = arith.constant 0 : index
    %c0_0 = arith.constant 0 : index
    %0 = vector.load %arg1[%c0, %c0_0] : memref<8x128xbf16, #tpu.memory_space<vmem>>, vector<8x128xbf16>
    %c0_1 = arith.constant 0 : index
    %c0_2 = arith.constant 0 : index
    %1 = vector.load %arg2[%c0_1, %c0_2] : memref<128x128xbf16, #tpu.memory_space<vmem>>, vector<128x128xbf16>
    %cst = arith.constant dense<0.000000e+00> : vector<8x128xf32>
    %2 = tpu.matmul %0, %1, %cst {dimension_numbers = #tpu.dot_dimension_numbers<[1], [0], [0], [1], [0, 0, 1, 1], [], []>} : vector<8x128xbf16>, vector<128x128xbf16>, vector<8x128xf32> -> vector<8x128xf32>
    %c0_3 = arith.constant 0 : index
    %c0_4 = arith.constant 0 : index
    %3 = vector.load %arg3[%c0_3, %c0_4] : memref<1x128xf32, #tpu.memory_space<vmem>>, vector<1x128xf32>
    %4 = vector.broadcast %3 : vector<1x128xf32> to vector<8x128xf32>
    %5 = arith.addf %2, %4 : vector<8x128xf32>
    %cst_5 = arith.constant 0.000000e+00 : f32
    %6 = vector.broadcast %cst_5 : f32 to vector<8x128xf32>
    %7 = arith.maximumf %5, %6 : vector<8x128xf32>
    %8 = arith.truncf %7 : vector<8x128xf32> to vector<8x128xbf16>
    %c0_6 = arith.constant 0 : index
    %c0_7 = arith.constant 0 : index
    %9 = vector.load %arg4[%c0_6, %c0_7] : memref<128x128xbf16, #tpu.memory_space<vmem>>, vector<128x128xbf16>
    %cst_8 = arith.constant dense<0.000000e+00> : vector<8x128xf32>
    %10 = tpu.matmul %8, %9, %cst_8 {dimension_numbers = #tpu.dot_dimension_numbers<[1], [0], [0], [1], [0, 0, 1, 1], [], []>} : vector<8x128xbf16>, vector<128x128xbf16>, vector<8x128xf32> -> vector<8x128xf32>
    %c0_9 = arith.constant 0 : index
    %c0_10 = arith.constant 0 : index
    %11 = vector.load %arg5[%c0_9, %c0_10] : memref<1x128xf32, #tpu.memory_space<vmem>>, vector<1x128xf32>
    %12 = vector.broadcast %11 : vector<1x128xf32> to vector<8x128xf32>
    %13 = arith.addf %10, %12 : vector<8x128xf32>
    %cst_11 = arith.constant dense<0xFF800000> : vector<8xf32>
    %14 = vector.multi_reduction <maximumf>, %13, %cst_11 [1] : vector<8x128xf32> to vector<8xf32>
    %15 = vector.shape_cast %14 : vector<8xf32> to vector<8x1xf32>
    %16 = vector.broadcast %15 : vector<8x1xf32> to vector<8x128xf32>
    %17 = arith.subf %13, %16 : vector<8x128xf32>
    %18 = math.exp %17 : vector<8x128xf32>
    %cst_12 = arith.constant dense<0.000000e+00> : vector<8xf32>
    %19 = vector.multi_reduction <add>, %18, %cst_12 [1] : vector<8x128xf32> to vector<8xf32>
    %20 = vector.shape_cast %19 : vector<8xf32> to vector<8x1xf32>
    %21 = tpu.reciprocal %20 {approx = true} : vector<8x1xf32> -> vector<8x1xf32>
    %22 = vector.broadcast %21 : vector<8x1xf32> to vector<8x128xf32>
    %23 = arith.mulf %18, %22 : vector<8x128xf32>
    %24 = arith.truncf %23 : vector<8x128xf32> to vector<8x128xbf16>
    %c0_13 = arith.constant 0 : index
    %c0_14 = arith.constant 0 : index
    %25 = vector.load %arg6[%c0_13, %c0_14] : memref<8x128xbf16, #tpu.memory_space<vmem>>, vector<8x128xbf16>
    tpu.vector_store %arg6[%c0_13, %c0_14], %24 {strides = array<i32>} : memref<8x128xbf16, #tpu.memory_space<vmem>>, vector<8x128xbf16>,
    return
  }
  func.func @transform_0(%arg0: i32) -> (i32, i32) {
    %c0_i32 = arith.constant 0 : i32
    %c0_i32_0 = arith.constant 0 : i32
    return %arg0, %c0_i32 : i32, i32
  }
  func.func @transform_1(%arg0: i32) -> (i32, i32) {
    %c0_i32 = arith.constant 0 : i32
    %c0_i32_0 = arith.constant 0 : i32
    %c0_i32_1 = arith.constant 0 : i32
    return %c0_i32, %c0_i32_0 : i32, i32
  }
  func.func @transform_2(%arg0: i32) -> (i32, i32) {
    %c0_i32 = arith.constant 0 : i32
    %c0_i32_0 = arith.constant 0 : i32
    %c0_i32_1 = arith.constant 0 : i32
    return %c0_i32, %c0_i32_0 : i32, i32
  }
  func.func @transform_3(%arg0: i32) -> (i32, i32) {
    %c0_i32 = arith.constant 0 : i32
    %c0_i32_0 = arith.constant 0 : i32
    %c0_i32_1 = arith.constant 0 : i32
    return %c0_i32, %c0_i32_0 : i32, i32
  }
  func.func @transform_4(%arg0: i32) -> (i32, i32) {
    %c0_i32 = arith.constant 0 : i32
    %c0_i32_0 = arith.constant 0 : i32
    %c0_i32_1 = arith.constant 0 : i32
    return %c0_i32, %c0_i32_0 : i32, i32
  }
  func.func @transform_5(%arg0: i32) -> (i32, i32) {
    %c0_i32 = arith.constant 0 : i32
    %c0_i32_0 = arith.constant 0 : i32
    return %arg0, %c0_i32 : i32, i32
  }
}

</mosaic_0001>

<bundles_post_ra>
// kernel: mlp_forward.1
= control target key start
LH: loop header
LB: loop body
LE: loop exit
PB: predicated region body
PF: predicated region fallthrough
CT: control target
= control target key end

     0   :  { %10 = vsyncpa [#allocation3], 0  ;;  %s428_s0 = inlined_call_operand.vmem [shape: bf16[8,128], index: 0, kind: input, shape index: {}]   ;;  %s429_s1 = inlined_call_operand.hbm [shape: bf16[128,128], index: 1, kind: input, shape index: {}]   ;;  %s430_s2 = inlined_call_operand.vmem [shape: f32[1,128], index: 2, kind: input, shape index: {}]   ;;  %s431_s3 = inlined_call_operand.hbm [shape: bf16[128,128], index: 3, kind: input, shape index: {}]   ;;  %s432_s4 = inlined_call_operand.vmem [shape: f32[1,128], index: 4, kind: input, shape index: {}]   ;;  %s433_s5 = inlined_call_operand.vmem [shape: bf16[8,128], index: 5, kind: output, shape index: {}]  }
   0x1   :  { %s18_s20 = sshll.u32 %s429_s1, 4  ;;  %s19_s20 = int_to_ptr.hbm [resolvable:$true] %s18_s20 }
   0x2   :  { %11 = vsyncpa [#allocation5], 0  ;;  %s376_s21 = smov [#allocation2]   ;;  %s33_s25 = sshll.u32 %s431_s3, 4  ;;  %s34_s25 = int_to_ptr.hbm [resolvable:$true] %s33_s25 }
   0x3   :  { %s20_s22 = sshll.u32 %s376_s21, 4  ;;  %s377_s26 = smov 64   ;;  %s21_s22 = int_to_ptr.vmem [resolvable:$true] %s20_s22 }
   0x4   :  { %s378_s27 = smov 4   ;;  %s379_s28 = smov [#allocation4]  }
   0x5   :  { %26 = dma.hbm_to_vmem [thread:$0]  %s19_s20, 1024, %s21_s22, [#allocation3], %s377_s26, %s377_s26, %s378_s27  }
   0x6   :  { %s35_s29 = sshll.u32 %s379_s28, 4  ;;  %s36_s29 = int_to_ptr.vmem [resolvable:$true] %s35_s29 }
   0x7   :  { %41 = dma.hbm_to_vmem [thread:$0]  %s34_s25, 1024, %s36_s29, [#allocation5], %s377_s26, %s377_s26, %s378_s27  }
   0x8   :  { %372 = dma.done.wait [#allocation3], 1024  }
   0x9   :  { %373 = vsyncadd [#allocation3], 4294966272 }
   0xa   :  { %374 = dma.done.wait [#allocation5], 1024  }
   0xb   :  { %375 = vsyncadd [#allocation5], 4294966272  ;;  %v305_v0 = vld [vmem:[#allocation2 + $0x38] sm:$0xff]  ;;  %v304_v1 = vld [vmem:[#allocation2 + $0x30] sm:$0xff] }
   0xc   :  { %121 = vmatpush.bf16.msra.mxu0 %v305_v0  ;;  %v313_v2 = vld [vmem:[#allocation4 + $0x38] sm:$0xff]  ;;  %v312_v3 = vld [vmem:[#allocation4 + $0x30] sm:$0xff]  ;;  %v303_v4 = vld [vmem:[#allocation2 + $0x28] sm:$0xff] }
   0xd   :  { %204 = vmatpush.bf16.msra.mxu1 %v313_v2  ;;  %v311_v5 = vld [vmem:[#allocation4 + $0x28] sm:$0xff]  ;;  %v302_v6 = vld [vmem:[#allocation2 + $0x20] sm:$0xff]  ;;  %v301_v8 = vld [vmem:[#allocation2 + $0x18] sm:$0xff] }
   0xe   :  { %v310_v7 = vld [vmem:[#allocation4 + $0x20] sm:$0xff]  ;;  %v309_v9 = vld [vmem:[#allocation4 + $0x18] sm:$0xff]  ;;  %v300_v10 = vld [vmem:[#allocation2 + $0x10] sm:$0xff] }
   0xf   :  { %v308_v11 = vld [vmem:[#allocation4 + $0x10] sm:$0xff]  ;;  %v299_v12 = vld [vmem:[#allocation2 + $0x8] sm:$0xff]  ;;  %v298_v13 = vld [vmem:[#allocation2] sm:$0xff] }
  0x10   :  { %122 = vmatpush.bf16.msra.mxu0 %v304_v1  ;;  %v52_v14 = vld [vmem:[%s428_s0] sm:$0xf]  ;;  %v307_v15 = vld [vmem:[#allocation4 + $0x8] sm:$0xff] }
  0x11   :  { %205 = vmatpush.bf16.msra.mxu1 %v312_v3  ;;  %v306_v16 = vld [vmem:[#allocation4] sm:$0xff] }
  0x12   :  { %v318_v17 = vld [vmem:[%s430_s2] ss:$0 sm:$0xff] }
  0x13   :  { %v319_v23 = vld [vmem:[%s432_s4] ss:$0 sm:$0xff] }
  0x14   :  { %123 = vmatpush.bf16.msra.mxu0 %v303_v4 }
  0x15   :  { %206 = vmatpush.bf16.msra.mxu1 %v311_v5 }
  0x18   :  { %124 = vmatpush.bf16.msra.mxu0 %v302_v6 }
  0x19   :  { %207 = vmatpush.bf16.msra.mxu1 %v310_v7 }
  0x1c   :  { %125 = vmatpush.bf16.msra.mxu0 %v301_v8 }
  0x1d   :  { %208 = vmatpush.bf16.msra.mxu1 %v309_v9 }
  0x20   :  { %126 = vmatpush.bf16.msra.mxu0 %v300_v10 }
  0x21   :  { %209 = vmatpush.bf16.msra.mxu1 %v308_v11 }
  0x24   :  { %127 = vmatpush.bf16.msra.mxu0 %v299_v12 }
  0x25   :  { %210 = vmatpush.bf16.msra.mxu1 %v307_v15 }
  0x28   :  { %128 = vmatpush.bf16.msra.mxu0 %v298_v13 }
  0x29   :  { %211 = vmatpush.bf16.msra.mxu1 %v306_v16 }
  0x2b   :  { %129 = vmatmul.bf16.vlgmr.msra.gmra.mxu0 %v52_v14 }
  0xa8   :  { %v130_v18 = vpop.f32.mrf.mxu0 }
  0xa9   :  { %v131_v19 = vadd.f32 %v318_v17, %v130_v18 }
  0xab   :  { %v134_v20 = vmax.f32 %v131_v19, 0.0 }
  0xad   :  { %v135_v21 = vpack.c.bf16 %v134_v20, %v134_v20 }
  0xaf   :  { %212 = vmatmul.bf16.vlgmr.msra.gmra.mxu1 %v135_v21 }
  0xb0   :  { %v132_v22 = vpop.f32.mrf.mxu0 }
 0x12c   :  { %v213_v24 = vpop.f32.mrf.mxu1 }
 0x12d   :  { %v214_v25 = vadd.f32 %v319_v23, %v213_v24 }
 0x12f   :  { %217 = vmax.xlane.f32.xlu0 %v214_v25 }
 0x134   :  { %v215_v26 = vpop.f32.mrf.mxu1 }
 0x1a2   :  { %v218_v27 = vpop.xlane.xlu0 %217 }
 0x1a3   :  { %v219_v28 = vsub.f32 %v214_v25, %v218_v27 }
 0x1a5   :  { %v220_v29 = vmul.f32 1.442695, %v219_v28 }
 0x1a7   :  { %320 = vpow2.f32 %v220_v29 }
 0x1ad   :  { %v321_v30 = vpop.eup %320 }
 0x1ae   :  { %222 = vadd.xlane.f32.xlu0 %v321_v30 }
 0x221   :  { %v223_v31 = vpop.xlane.xlu0 %222 }
 0x222   :  { %322 = vrcp.f32 %v223_v31 }
 0x228   :  { %v323_v32 = vpop.eup %322 }
 0x229   :  { %v225_v33 = vmul.f32 %v323_v32, %v321_v30 }
 0x22b   :  { %v226_v34 = vpack.c.bf16 %v225_v33, %v225_v33 }
 0x22d   :  { %227 = vst [vmem:[%s433_s5] sm:$0xf] %v226_v34 }
 0x22e   :  { %232 = vsyncpa [#allocation3], 1 }
 0x22f   :  { %233 = vsyncpa [#allocation5], 1 }

</bundles_post_ra>
